<compile_context>
chip_gen: v7x
topology: tpu7x:2x2x1
jax: 0.10.0
libtpu: 0.0.40
codegen_flags: <defaults>
</compile_context>

<pallas_src>
import jax
import jax.numpy as jnp
from jax.experimental import pallas as pl
from jax.experimental.pallas import tpu as pltpu

STATE_DIM = 3     # Pendulum-v1 observation_space.shape[0]
ACTION_DIM = 1    # Pendulum-v1 action_space.shape[0]
MAX_ACTION = 2.0  # Pendulum-v1 action_space.high[0]
H1, H2 = 64, 32

TB_MAX = 2048        # maximum batch-tile rows per grid step
SMALL_BATCH = 256    # <= this: single grid step (latency-critical rollout path)

# Packed parameter slab layout: (SLAB_ROWS, SLAB_COLS) float32, one DMA.
SLAB_COLS = H1                       # 64 lanes
ROW_W1T = 0                          # rows 0:3   cols 0:64 -> W1^T (3, 64)
ROW_B1 = STATE_DIM                   # row  3     cols 0:64 -> b1
ROW_B2 = ROW_B1 + 1                  # row  4     cols 0:32 -> b2
ROW_W3 = ROW_B2 + 1                  # row  5     cols 0:32 -> W3 row (32,)
ROW_B3 = ROW_W3 + 1                  # row  6     col  0    -> b3
ROW_W2T = 8                          # rows 8:72  cols 0:32 -> W2^T (64, 32), 8-aligned
SLAB_ROWS = ROW_W2T + H1             # 72 (multiple of 8)


def _round_up(x, m):
    return ((x + m - 1) // m) * m


def _choose_tile(batch):
    """Batch-tile rows. Small batch -> one block; large -> >=2 parallel tiles."""
    if batch <= SMALL_BATCH:
        return batch                          # block == full dim (always legal)
    half = -(-batch // 2)                     # >=2 tiles keeps both v7x TCs busy
    return min(TB_MAX, _round_up(half, 8))


def actor_kernel(x_ref, w_ref, o_ref):
    """One batch tile.  x_ref: (tb, 3); w_ref: (72, 64) slab; o_ref: (tb, 1)."""
    x = x_ref[...]                                    # (tb, 3), natural layout

    # ---- layer 1: K=3 contraction as 3 VPU broadcast-FMAs (skip the MXU) ----
    w1t = w_ref[ROW_W1T:ROW_W1T + STATE_DIM, :]       # (3, 64) = W1^T
    b1 = w_ref[ROW_B1:ROW_B1 + 1, :]                  # (1, 64)
    h1 = (x[:, 0:1] * w1t[0:1, :]
          + x[:, 1:2] * w1t[1:2, :]
          + x[:, 2:3] * w1t[2:3, :]
          + b1)                                       # (tb, 64)
    h1 = jnp.maximum(h1, 0.0)

    # ---- layer 2: the only MXU matmul ----
    w2t = w_ref[ROW_W2T:ROW_W2T + H1, 0:H2]           # (64, 32) = W2^T
    b2 = w_ref[ROW_B2:ROW_B2 + 1, 0:H2]               # (1, 32)
    h2 = jnp.dot(h1, w2t, preferred_element_type=jnp.float32) + b2
    h2 = jnp.maximum(h2, 0.0)                         # (tb, 32)

    # ---- layer 3: 1-wide output -> VPU multiply + XLU lane reduction ----
    w3r = w_ref[ROW_W3:ROW_W3 + 1, 0:H2]              # (1, 32) = W3 row
    b3 = w_ref[ROW_B3:ROW_B3 + 1, 0:1]                # (1, 1)
    h3 = jnp.sum(h2 * w3r, axis=1, keepdims=True) + b3  # (tb, 1)

    o_ref[...] = (MAX_ACTION * jnp.tanh(h3)).astype(o_ref.dtype)


def pack_params(params):
    """Pack 6 PyTorch-native tensors (W:(out,in), b:(out,)) into ONE slab."""
    w1, b1, w2, b2, w3, b3 = params
    slab = jnp.zeros((SLAB_ROWS, SLAB_COLS), jnp.float32)
    slab = slab.at[ROW_W1T:ROW_W1T + STATE_DIM, :].set(w1.T)      # (3, 64)
    slab = slab.at[ROW_B1, :].set(b1)                              # (64,)
    slab = slab.at[ROW_B2, 0:H2].set(b2)                           # (32,)
    slab = slab.at[ROW_W3, 0:H2].set(w3[0, :])                     # (32,)
    slab = slab.at[ROW_B3, 0].set(b3[0])                           # scalar
    slab = slab.at[ROW_W2T:ROW_W2T + H1, 0:H2].set(w2.T)           # (64, 32)
    return slab


@jax.jit
def actor_forward(x, slab):
    """x: (B, STATE_DIM) -> (B, ACTION_DIM), matching the PyTorch forward."""
    x = x.astype(jnp.float32)
    batch = x.shape[0]
    tb = _choose_tile(batch)
    grid = (pl.cdiv(batch, tb),)
    return pl.pallas_call(
        actor_kernel,
        out_shape=jax.ShapeDtypeStruct((batch, ACTION_DIM), jnp.float32),
        grid=grid,
        in_specs=[
            pl.BlockSpec((tb, STATE_DIM), lambda i: (i, 0)),          # batch tile
            pl.BlockSpec((SLAB_ROWS, SLAB_COLS), lambda i: (0, 0)),   # resident weights
        ],
        out_specs=pl.BlockSpec((tb, ACTION_DIM), lambda i: (i, 0)),
        compiler_params=pltpu.CompilerParams(
            dimension_semantics=("parallel",)),
        cost_estimate=pl.CostEstimate(
            flops=2 * batch * (STATE_DIM * H1 + H1 * H2 + H2 * ACTION_DIM),
            transcendentals=batch,  # tanh
            bytes_accessed=4 * (batch * STATE_DIM + SLAB_ROWS * SLAB_COLS
                                + batch * ACTION_DIM)),
    )(x, slab)


def init_params(key):
    # Deterministic init mirroring nn.Linear default: U(-1/sqrt(fan_in), ...),
    # PyTorch-native shapes W:(out_features, in_features), b:(out_features,).
    ks = jax.random.split(key, 6)

    def linear(kw, kb, fan_in, fan_out):
        bound = 1.0 / jnp.sqrt(jnp.float32(fan_in))
        w = jax.random.uniform(kw, (fan_out, fan_in), jnp.float32, -bound, bound)
        b = jax.random.uniform(kb, (fan_out,), jnp.float32, -bound, bound)
        return w, b

    w1, b1 = linear(ks[0], ks[1], STATE_DIM, H1)
    w2, b2 = linear(ks[2], ks[3], H1, H2)
    w3, b3 = linear(ks[4], ks[5], H2, ACTION_DIM)
    return (w1, b1, w2, b2, w3, b3)


def reference_forward(x, params):
    w1, b1, w2, b2, w3, b3 = params
    h = jnp.maximum(x @ w1.T + b1, 0.0)
    h = jnp.maximum(h @ w2.T + b2, 0.0)
    return MAX_ACTION * jnp.tanh(h @ w3.T + b3)


if __name__ == "__main__":
    key = jax.random.PRNGKey(0)
    k_params, k_x1, k_x2 = jax.random.split(key, 3)
    params = init_params(k_params)
    slab = pack_params(params)

    ok = True
    # Small (rollout-sized) batch: single grid step, block == full array.
    x_small = jax.random.normal(k_x1, (4, STATE_DIM), jnp.float32)
    out_small = actor_forward(x_small, slab)
    jax.block_until_ready(out_small)
    ref_small = reference_forward(x_small, params)
    ok &= out_small.shape == (4, ACTION_DIM)
    ok &= bool(jnp.allclose(out_small, ref_small, atol=1e-5, rtol=1e-5))

    # Larger ragged batch: 2-tile parallel grid with a masked partial last block.
    x_big = jax.random.normal(k_x2, (300, STATE_DIM), jnp.float32)
    out_big = actor_forward(x_big, slab)
    jax.block_until_ready(out_big)
    ref_big = reference_forward(x_big, params)
    ok &= out_big.shape == (300, ACTION_DIM)
    ok &= bool(jnp.allclose(out_big, ref_big, atol=1e-5, rtol=1e-5))

    assert ok
    print("KERNEL_OK")
</pallas_src>

<mosaic_0001>
module attributes {stable_mosaic.version = 11 : i64} {
  func.func @actor_kernel(%arg0: i32, %arg1: memref<4x3xf32, #tpu.memory_space<vmem>>, %arg2: memref<72x64xf32, #tpu.memory_space<vmem>>, %arg3: memref<4x1xf32, #tpu.memory_space<vmem>>) attributes {dimension_semantics = [#tpu.dimension_semantics<parallel>], iteration_bounds = array<i64: 1>, scalar_prefetch = 0 : i64, scratch_operands = 0 : i64, tpu.core_type = #tpu.core_type<tc>, window_params = [{transform_indices = @transform_0, window_bounds = array<i64: 4, 3>}, {pipeline_mode = #tpu.pipeline_mode<synchronous>, transform_indices = @transform_1, window_bounds = array<i64: 72, 64>}, {transform_indices = @transform_2, window_bounds = array<i64: 4, 1>}]} {
    %c0 = arith.constant 0 : index
    %c0_0 = arith.constant 0 : index
    %0 = vector.load %arg1[%c0, %c0_0] : memref<4x3xf32, #tpu.memory_space<vmem>>, vector<4x3xf32>
    %c0_1 = arith.constant 0 : index
    %c0_2 = arith.constant 0 : index
    %1 = vector.load %arg2[%c0_1, %c0_2] : memref<72x64xf32, #tpu.memory_space<vmem>>, vector<3x64xf32>
    %c3 = arith.constant 3 : index
    %c0_3 = arith.constant 0 : index
    %2 = vector.load %arg2[%c3, %c0_3] : memref<72x64xf32, #tpu.memory_space<vmem>>, vector<1x64xf32>
    %3 = vector.extract_strided_slice %0 {offsets = [0, 0], sizes = [4, 1], strides = [1, 1]} : vector<4x3xf32> to vector<4x1xf32>
    %4 = vector.extract_strided_slice %1 {offsets = [0, 0], sizes = [1, 64], strides = [1, 1]} : vector<3x64xf32> to vector<1x64xf32>
    %5 = vector.broadcast %3 : vector<4x1xf32> to vector<4x64xf32>
    %6 = vector.broadcast %4 : vector<1x64xf32> to vector<4x64xf32>
    %7 = arith.mulf %5, %6 : vector<4x64xf32>
    %8 = vector.extract_strided_slice %0 {offsets = [0, 1], sizes = [4, 1], strides = [1, 1]} : vector<4x3xf32> to vector<4x1xf32>
    %9 = vector.extract_strided_slice %1 {offsets = [1, 0], sizes = [1, 64], strides = [1, 1]} : vector<3x64xf32> to vector<1x64xf32>
    %10 = vector.broadcast %8 : vector<4x1xf32> to vector<4x64xf32>
    %11 = vector.broadcast %9 : vector<1x64xf32> to vector<4x64xf32>
    %12 = arith.mulf %10, %11 : vector<4x64xf32>
    %13 = arith.addf %7, %12 : vector<4x64xf32>
    %14 = vector.extract_strided_slice %0 {offsets = [0, 2], sizes = [4, 1], strides = [1, 1]} : vector<4x3xf32> to vector<4x1xf32>
    %15 = vector.extract_strided_slice %1 {offsets = [2, 0], sizes = [1, 64], strides = [1, 1]} : vector<3x64xf32> to vector<1x64xf32>
    %16 = vector.broadcast %14 : vector<4x1xf32> to vector<4x64xf32>
    %17 = vector.broadcast %15 : vector<1x64xf32> to vector<4x64xf32>
    %18 = arith.mulf %16, %17 : vector<4x64xf32>
    %19 = arith.addf %13, %18 : vector<4x64xf32>
    %20 = vector.broadcast %2 : vector<1x64xf32> to vector<4x64xf32>
    %21 = arith.addf %19, %20 : vector<4x64xf32>
    %cst = arith.constant 0.000000e+00 : f32
    %22 = vector.broadcast %cst : f32 to vector<4x64xf32>
    %23 = arith.maximumf %21, %22 : vector<4x64xf32>
    %c8 = arith.constant 8 : index
    %c0_4 = arith.constant 0 : index
    %24 = vector.load %arg2[%c8, %c0_4] : memref<72x64xf32, #tpu.memory_space<vmem>>, vector<64x32xf32>
    %c4 = arith.constant 4 : index
    %c0_5 = arith.constant 0 : index
    %25 = vector.load %arg2[%c4, %c0_5] : memref<72x64xf32, #tpu.memory_space<vmem>>, vector<1x32xf32>
    %cst_6 = arith.constant dense<0.000000e+00> : vector<4x32xf32>
    %26 = tpu.matmul %23, %24, %cst_6 {dimension_numbers = #tpu.dot_dimension_numbers<[1], [0], [0], [1], [0, 0, 1, 1], [], []>} : vector<4x64xf32>, vector<64x32xf32>, vector<4x32xf32> -> vector<4x32xf32>
    %27 = vector.broadcast %25 : vector<1x32xf32> to vector<4x32xf32>
    %28 = arith.addf %26, %27 : vector<4x32xf32>
    %cst_7 = arith.constant 0.000000e+00 : f32
    %29 = vector.broadcast %cst_7 : f32 to vector<4x32xf32>
    %30 = arith.maximumf %28, %29 : vector<4x32xf32>
    %c5 = arith.constant 5 : index
    %c0_8 = arith.constant 0 : index
    %31 = vector.load %arg2[%c5, %c0_8] : memref<72x64xf32, #tpu.memory_space<vmem>>, vector<1x32xf32>
    %c6 = arith.constant 6 : index
    %c0_9 = arith.constant 0 : index
    %32 = vector.load %arg2[%c6, %c0_9] : memref<72x64xf32, #tpu.memory_space<vmem>>, vector<1x1xf32>
    %33 = vector.broadcast %31 : vector<1x32xf32> to vector<4x32xf32>
    %34 = arith.mulf %30, %33 : vector<4x32xf32>
    %cst_10 = arith.constant dense<0.000000e+00> : vector<4xf32>
    %35 = vector.multi_reduction <add>, %34, %cst_10 [1] : vector<4x32xf32> to vector<4xf32>
    %36 = vector.shape_cast %35 : vector<4xf32> to vector<4x1xf32>
    %37 = vector.broadcast %32 : vector<1x1xf32> to vector<4x1xf32>
    %38 = arith.addf %36, %37 : vector<4x1xf32>
    %39 = math.tanh %38 : vector<4x1xf32>
    %cst_11 = arith.constant 2.000000e+00 : f32
    %40 = vector.broadcast %cst_11 : f32 to vector<4x1xf32>
    %41 = arith.mulf %40, %39 : vector<4x1xf32>
    %c0_12 = arith.constant 0 : index
    %c0_13 = arith.constant 0 : index
    %42 = vector.load %arg3[%c0_12, %c0_13] : memref<4x1xf32, #tpu.memory_space<vmem>>, vector<4x1xf32>
    tpu.vector_store %arg3[%c0_12, %c0_13], %41 {strides = array<i32>} : memref<4x1xf32, #tpu.memory_space<vmem>>, vector<4x1xf32>,
    return
  }
  func.func @transform_0(%arg0: i32) -> (i32, i32) {
    %c0_i32 = arith.constant 0 : i32
    %c0_i32_0 = arith.constant 0 : i32
    return %arg0, %c0_i32 : i32, i32
  }
  func.func @transform_1(%arg0: i32) -> (i32, i32) {
    %c0_i32 = arith.constant 0 : i32
    %c0_i32_0 = arith.constant 0 : i32
    %c0_i32_1 = arith.constant 0 : i32
    return %c0_i32, %c0_i32_0 : i32, i32
  }
  func.func @transform_2(%arg0: i32) -> (i32, i32) {
    %c0_i32 = arith.constant 0 : i32
    %c0_i32_0 = arith.constant 0 : i32
    return %arg0, %c0_i32 : i32, i32
  }
}

</mosaic_0001>

<bundles_post_ra>
// kernel: actor_forward.1
= control target key start
LH: loop header
LB: loop body
LE: loop exit
PB: predicated region body
PF: predicated region fallthrough
CT: control target
= control target key end

     0   :  { %v219_v0 = vmov 0   ;;  %v220_v2 = vmov 2   ;;  %v221_v7 = vmov 0.0|0.0   ;;  %v222_v10 = vmov 1   ;;  %s285_s0 = inlined_call_operand.vmem [shape: f32[4,3], index: 0, kind: input, shape index: {}]   ;;  %s286_s1 = inlined_call_operand.vmem [shape: f32[72,64], index: 1, kind: input, shape index: {}]   ;;  %s287_s2 = inlined_call_operand.vmem [shape: f32[4,1], index: 2, kind: output, shape index: {}]  }
   0x1   :  { %213 = vset.pattern.permute.xlu0 %v219_v0  ;;  %v11_v1 = vld [vmem:[%s285_s0] sm:$0xf]  ;;  %215 = vset.pattern.permute.xlu1 %v220_v2  ;;  %v50_v3 = vld [vmem:[%s286_s1 + $0x8] sm:$0xff]  ;;  %v51_v4 = vld [vmem:[%s286_s1 + $0x10] sm:$0xff]  ;;  %vm223_vm0 = vmmov 0   ;;  %v224_v17 = vmov 0.0   ;;  %v19_v18 = vlaneseq }
   0x2   :  { %16 = vperm.xlu0 %213, %v11_v1   ;;  %35 = vperm.xlu1 %215, %v11_v1   ;;  %v52_v5 = vld [vmem:[%s286_s1 + $0x18] sm:$0xff]  ;;  %v53_v6 = vld [vmem:[%s286_s1 + $0x20] sm:$0xff]  ;;  %v196_v8 = vpack.c.bf16 %v51_v4, %v50_v3  ;;  %v54_v11 = vld [vmem:[%s286_s1 + $0x28] sm:$0xff]  ;;  %vm63_vm1 = vcmask 523264   ;;  %vm145_vm2 = vcmask 257024   ;;  %vm156_vm3 = vcmask 3072  }
   0x3   :  { %195 = vmatprep.subr.bf16.mxu0 %v221_v7  ;;  %v199_v9 = vpack.c.bf16 %v53_v6, %v52_v5  ;;  %v55_v12 = vld [vmem:[%s286_s1 + $0x30] sm:$0xff]  ;;  %v56_v14 = vld [vmem:[%s286_s1 + $0x38] sm:$0xff]  ;;  %v57_v15 = vld [vmem:[%s286_s1 + $0x40] sm:$0xff]  ;;  %192 = vmatprep.mubr.msk.f32.mxu0 %vm223_vm0, %v224_v17  ;;  %v20_v19 = vshrl.u32 %v19_v18, 7 }
   0x4   :  { %197 = vmatpush3.bf16.msra.mxu0 %v196_v8  ;;  %v202_v13 = vpack.c.bf16 %v55_v12, %v54_v11  ;;  %v205_v16 = vpack.c.bf16 %v57_v15, %v56_v14  ;;  %v12_v23 = vld [vmem:[%s286_s1] sm:$0x7]  ;;  %v162_v34 = vld [vmem:[%s286_s1 + $0x3] ss:$0 sm:$0xff]  ;;  %v163_v38 = vld [vmem:[%s286_s1 + $0x4] ss:$0 sm:$0xff] }
   0x5   :  { %198 = vmatprep.subr.bf16.mxu0 %v221_v7  ;;  %v21_v20 = vsub.s32 0, %v20_v19  ;;  %v30_v21 = vsub.s32 1, %v20_v19  ;;  %v40_v22 = vsub.s32 2, %v20_v19  ;;  %v165_v42 = vld [vmem:[%s286_s1 + $0x5] ss:$0 sm:$0xff] }
   0x6   :  { %214 = vset.pattern.permute.xlu0 %v222_v10  ;;  %v166_v46 = vld [vmem:[%s286_s1 + $0x6] ss:$0 sm:$0xff] }
   0x7   :  { %25 = vperm.xlu0 %214, %v11_v1   ;;  %v22_v25 = vrot.slane %v12_v23, %v21_v20  ;;  %v31_v26 = vrot.slane %v12_v23, %v30_v21  ;;  %v41_v27 = vrot.slane %v12_v23, %v40_v22 }
   0x8   :  { %200 = vmatpush3.bf16.msra.mxu0 %v199_v9 }
   0x9   :  { %201 = vmatprep.subr.bf16.mxu0 %v221_v7 }
   0xb   :  { %216 = vset.pattern.permute.xlu0 %v220_v2 }
   0xc   :  { %203 = vmatpush3.bf16.msra.mxu0 %v202_v13 }
   0xd   :  { %204 = vmatprep.subr.bf16.mxu0 %v221_v7 }
  0x10   :  { %206 = vmatpush3.bf16.msra.mxu0 %v205_v16 }
  0x81   :  { %v17_v24 = vpop.permute.xlu0 %16  ;;  %v36_v28 = vpop.permute.xlu1 %35 }
  0x82   :  { %v23_v30 = vmul.f32 %v22_v25, %v17_v24  ;;  %v42_v32 = vmul.f32 %v41_v27, %v36_v28 }
  0x86   :  { %v26_v29 = vpop.permute.xlu0 %25 }
  0x87   :  { %v32_v31 = vmul.f32 %v31_v26, %v26_v29 }
  0x89   :  { %v33_v33 = vadd.f32 %v32_v31, %v23_v30 }
  0x8b   :  { %v43_v35 = vadd.f32 %v42_v32, %v33_v33 }
  0x8d   :  { %v48_v36 = vadd.f32 %v162_v34, %v43_v35 }
  0x8f   :  { %v49_v37 = vmax.f32 %v48_v36, 0.0 }
  0x91   :  { %193 = vmatmul.mubr.msk.f32.vlgmr.msra.gmra.mrb[0].mxu0 %vm63_vm1, %v49_v37 }
 0x164   :  { %v133_v39 = vpop.f32.mrb[0].mxu0 }
 0x165   :  { %v134_v40 = vadd.f32 %v163_v38, %v133_v39  ;;  %v194_v41 = vpop.f32.mrb[1].mxu0 }
 0x167   :  { %v137_v43 = vmax.f32 %v134_v40, 0.0 }
 0x169   :  { %v144_v44 = vmul.f32 %v165_v42, %v137_v43 }
 0x16b   :  { %v146_v45 = vsel %vm145_vm2, %v144_v44, 0.0 }
 0x16c   :  { %147 = vadd.xlane.f32.xlu1 %v146_v45 }
 0x1f9   :  { %v148_v47 = vpop.xlane.xlu1 %147 }
 0x1fa   :  { %v153_v48 = vadd.f32 %v166_v46, %v148_v47 }
 0x1fc   :  { %217 = vtanh.f32 %v153_v48 }
 0x206   :  { %v218_v49 = vpop.eup %217 }
 0x207   :  { %v155_v50 = vmul.f32 2.0, %v218_v49 }
 0x209   :  { %157 = vst.msk [vmem:[%s287_s2] sm:$0xf] %vm156_vm3, %v155_v50 }

</bundles_post_ra>
